<compile_context>
chip_gen: v6e
topology: v6e:2x2x1
jax: 0.10.0
libtpu: 0.0.40
codegen_flags: <defaults>
</compile_context>

<pallas_src>
import jax
import jax.numpy as jnp
from jax.experimental import pallas as pl
from jax.experimental.pallas import tpu as pltpu


def _copy_kernel(x_ref, o_ref):
    # Identity copy of one lane-dense tile; the squeeze itself is metadata handled
    # by the wrapper-side reshapes.
    o_ref[...] = x_ref[...]


# ~2 MiB per block => 4 double-buffered blocks ~ 8 MiB VMEM, safe on v5e defaults.
_TARGET_BLOCK_BYTES = 2 * 1024 * 1024
_MAX_LANE_COLS = 4096          # widest lane-dense slab we will reshape into
_FALLBACK_MAX_BYTES = 8 * 1024 * 1024  # single-block fallback size cap


def _best_lane_cols(n: int) -> int | None:
    """Largest multiple of 128 that divides n, capped at _MAX_LANE_COLS."""
    if n % 128 != 0:
        return None
    m = n // 128
    best_k = 1
    for k in range(min(m, _MAX_LANE_COLS // 128), 0, -1):
        if m % k == 0:
            best_k = k
            break
    return 128 * best_k


def _identity_copy_2d(x2d: jax.Array) -> jax.Array:
    """Tiled, lane-dense identity copy of a 2D array (cols % 128 == 0)."""
    rows, cols = x2d.shape
    itemsize = jnp.dtype(x2d.dtype).itemsize

    # Rows per block: ~_TARGET_BLOCK_BYTES per tile, rounded down to a multiple of 8
    # (sublane granularity); full extent if the whole slab fits in one block.
    row_budget = max(8, (_TARGET_BLOCK_BYTES // (cols * itemsize)) // 8 * 8)
    if rows <= row_budget:
        row_block = rows                      # full extent -> always legal
        grid = (1,)
    else:
        row_block = row_budget                # multiple of 8
        grid = (pl.cdiv(rows, row_block),)    # ragged last block handled by Pallas

    return pl.pallas_call(
        _copy_kernel,
        out_shape=jax.ShapeDtypeStruct((rows, cols), x2d.dtype),
        grid=grid,
        in_specs=[pl.BlockSpec((row_block, cols), lambda i: (i, 0))],
        out_specs=pl.BlockSpec((row_block, cols), lambda i: (i, 0)),
        compiler_params=pltpu.CompilerParams(
            dimension_semantics=("parallel",)),
        cost_estimate=pl.CostEstimate(
            flops=0,
            transcendentals=0,
            bytes_accessed=2 * rows * cols * itemsize),
    )(x2d)


def _identity_copy_flat(x2d: jax.Array) -> jax.Array:
    """Fallback single-block copy for totals not divisible by 128 (shape (1, n))."""
    rows, cols = x2d.shape  # rows == 1
    itemsize = jnp.dtype(x2d.dtype).itemsize
    return pl.pallas_call(
        _copy_kernel,
        out_shape=jax.ShapeDtypeStruct((rows, cols), x2d.dtype),
        grid=(1,),
        in_specs=[pl.BlockSpec((rows, cols), lambda i: (0, 0))],
        out_specs=pl.BlockSpec((rows, cols), lambda i: (0, 0)),
        cost_estimate=pl.CostEstimate(
            flops=0,
            transcendentals=0,
            bytes_accessed=2 * rows * cols * itemsize),
    )(x2d)


def squeeze_pallas(x: jax.Array, dim: int) -> jax.Array:
    """Pallas equivalent of torch.Tensor.squeeze(dim)."""
    ndim = x.ndim
    d = dim + ndim if dim < 0 else dim
    if d < 0 or d >= ndim:
        raise ValueError(f"dim {dim} out of range for rank-{ndim} tensor")

    # torch semantics: squeeze(dim) is the identity when size(dim) != 1.
    # Pure metadata -> no kernel, no HBM round trip.
    if x.shape[d] != 1:
        return x

    out_shape = x.shape[:d] + x.shape[d + 1:]
    n = x.size

    # Empty tensors or 0-d result: metadata-only reshape, nothing to copy.
    if n == 0 or len(out_shape) == 0:
        return jnp.reshape(x, out_shape)

    itemsize = jnp.dtype(x.dtype).itemsize
    cols = _best_lane_cols(n)

    if cols is not None:
        out2d = _identity_copy_2d(jnp.reshape(x, (n // cols, cols)))
    elif n * itemsize <= _FALLBACK_MAX_BYTES:
        # Total size not a multiple of 128: single full-extent block fallback.
        out2d = _identity_copy_flat(jnp.reshape(x, (1, n)))
    else:
        # TODO(synk): huge non-128-divisible totals would need a padded/masked tiled
        # copy; squeeze is metadata-only, so fall back to a pure reshape.
        return jnp.reshape(x, out_shape)

    return jnp.reshape(out2d, out_shape)


if __name__ == "__main__":
    key = jax.random.PRNGKey(0)
    k0, k1 = jax.random.split(key)

    # NCHW input with a size-1 channel dim, as Squeeze(dim=1) would see inside an
    # nn.Sequential after e.g. a conv producing 1 channel.
    B, C, H, W = 2, 1, 16, 16
    x = jax.random.normal(k0, (B, C, H, W), dtype=jnp.float32)

    # Real squeeze along the size-1 channel dim.
    out = jax.block_until_ready(squeeze_pallas(x, 1))
    ref = jnp.squeeze(x, axis=1)
    assert out.shape == ref.shape == (B, H, W), (out.shape, ref.shape)
    assert out.dtype == ref.dtype
    assert bool(jnp.all(out == ref))

    # Negative dim behaves like torch.
    out_neg = jax.block_until_ready(squeeze_pallas(x, -3))
    assert out_neg.shape == (B, H, W)
    assert bool(jnp.all(out_neg == ref))

    # No-op case: squeezing a dim whose size != 1 returns the tensor unchanged
    # (no kernel launch, zero HBM traffic).
    out2 = jax.block_until_ready(squeeze_pallas(x, 2))
    assert out2.shape == x.shape
    assert bool(jnp.all(out2 == x))

    # Leading size-1 dim with a total size that is not a multiple of 128
    # (exercises the single-block fallback path).
    y = jax.random.normal(k1, (1, 3, 5, 7), dtype=jnp.float32)
    out3 = jax.block_until_ready(squeeze_pallas(y, 0))
    ref3 = jnp.squeeze(y, axis=0)
    assert out3.shape == ref3.shape == (3, 5, 7)
    assert bool(jnp.all(out3 == ref3))

    # Larger lane-dense case (exercises the multi-block, multiple-of-384 cols path).
    z = jax.random.normal(k1, (4, 1, 48, 128), dtype=jnp.float32)
    out4 = jax.block_until_ready(squeeze_pallas(z, 1))
    ref4 = jnp.squeeze(z, axis=1)
    assert out4.shape == ref4.shape == (4, 48, 128)
    assert bool(jnp.all(out4 == ref4))

    print("KERNEL_OK")
</pallas_src>

<mosaic_0001>
module attributes {stable_mosaic.version = 11 : i64} {
  func.func @_copy_kernel(%arg0: i32, %arg1: memref<1x512xf32, #tpu.memory_space<vmem>>, %arg2: memref<1x512xf32, #tpu.memory_space<vmem>>) attributes {dimension_semantics = [#tpu.dimension_semantics<parallel>], iteration_bounds = array<i64: 1>, scalar_prefetch = 0 : i64, scratch_operands = 0 : i64, tpu.core_type = #tpu.core_type<tc>, window_params = [{transform_indices = @transform_0, window_bounds = array<i64: 1, 512>}, {transform_indices = @transform_1, window_bounds = array<i64: 1, 512>}]} {
    %c0 = arith.constant 0 : index
    %c0_0 = arith.constant 0 : index
    %0 = vector.load %arg1[%c0, %c0_0] : memref<1x512xf32, #tpu.memory_space<vmem>>, vector<1x512xf32>
    %c0_1 = arith.constant 0 : index
    %c0_2 = arith.constant 0 : index
    %1 = vector.load %arg2[%c0_1, %c0_2] : memref<1x512xf32, #tpu.memory_space<vmem>>, vector<1x512xf32>
    tpu.vector_store %arg2[%c0_1, %c0_2], %0 {strides = array<i32>} : memref<1x512xf32, #tpu.memory_space<vmem>>, vector<1x512xf32>,
    return
  }
  func.func @transform_0(%arg0: i32) -> (i32, i32) {
    %c0_i32 = arith.constant 0 : i32
    %c0_i32_0 = arith.constant 0 : i32
    return %arg0, %c0_i32 : i32, i32
  }
  func.func @transform_1(%arg0: i32) -> (i32, i32) {
    %c0_i32 = arith.constant 0 : i32
    %c0_i32_0 = arith.constant 0 : i32
    return %arg0, %c0_i32 : i32, i32
  }
}

</mosaic_0001>

<bundles_post_ra>
// kernel: tpu_custom_call.1
= control target key start
LH: loop header
LB: loop body
LE: loop exit
PB: predicated region body
PF: predicated region fallthrough
CT: control target
= control target key end

     0   :  { %6 = vsyncpa [#allocation3], 0  ;;  %s106_s0 = inlined_call_operand.hbm [shape: f32[1,512], index: 0, kind: input, shape index: {}]   ;;  %s107_s1 = inlined_call_operand.hbm [shape: f32[1,512], index: 1, kind: output, shape index: {}]  }
   0x1   :  { %7 = vsyncpa [#allocation4], 0  ;;  %s88_s6 = smov [#allocation2]  }
   0x2   :  { %s14_s7 = sshll.u32 %s88_s6, 4  ;;  %s15_s7 = int_to_ptr.vmem [resolvable:$true] %s14_s7 }
   0x3   :  { %s52_s8 = scalar_lea.vmem %s15_s7, 64  ;;  %p57_p1 = scmp.lt.s32.totalorder %s15_s7, %s15_s7 }
   0x4   :  { %p53_p0 = scmp.ne.s32.totalorder %s15_s7, %s52_s8  ;;  %p58_p2 = scmp.lt.s32.totalorder %s52_s8, %s52_s8 }
   0x6   :  { %p59_p3 = por %p58_p2, %p57_p1 }
   0x8   :  { %p60_p4 = pnand %p59_p3, %p53_p0 }
   0xa   :  { %63 = shalt.err (!%p60_p4)
}
   0xb   :  { %17 = dma.hbm_to_vmem [thread:$0]  %s106_s0, 64, %s15_s7, [#allocation3]  }
   0xc   :  { %84 = dma.done.wait [#allocation3], 64  }
   0xd   :  { %85 = vsyncadd [#allocation3], 4294967232  ;;  %v22_v0 = vlaneseq  ;;  %s89_s11 = smov [#allocation5]   ;;  %v21_v1 = vld [vmem:[#allocation2] sm:$0xf] }
   0xe   :  { %s33_s12 = sshll.u32 %s89_s11, 4  ;;  %s34_s12 = int_to_ptr.vmem [resolvable:$true] %s33_s12 }
   0xf   :  { %vm24_vm0 = vcmp.lt.s32.totalorder %v22_v0, 512  ;;  %s64_s13 = scalar_lea.vmem %s34_s12, 64  ;;  %p69_p6 = scmp.lt.s32.totalorder %s34_s12, %s34_s12 }
  0x10   :  { %26 = vst.msk [vmem:[#allocation5] sm:$0xf] %vm24_vm0, %v21_v1  ;;  %p65_p5 = scmp.ne.s32.totalorder %s34_s12, %s64_s13  ;;  %p70_p7 = scmp.lt.s32.totalorder %s64_s13, %s64_s13 }
  0x12   :  { %p71_p8 = por %p70_p7, %p69_p6 }
  0x14   :  { %p72_p9 = pnand %p71_p8, %p65_p5 }
  0x16   :  { %75 = shalt.err (!%p72_p9)
}
  0x17   :  { %36 = dma.vmem_to_hbm [thread:$0]  %s34_s12, 64, %s107_s1, [#allocation4]  }
  0x18   :  { %86 = dma.done.wait [#allocation4], 64  }
  0x19   :  { %87 = vsyncadd [#allocation4], 4294967232 }
  0x1a   :  { %40 = vsyncpa [#allocation3], 1 }
  0x1b   :  { %41 = vsyncpa [#allocation4], 1 }

</bundles_post_ra>
